<compile_context>
chip_gen: v6e
topology: v6e:2x2x1
jax: 0.10.0
libtpu: 0.0.40
codegen_flags: <defaults>
</compile_context>

<pallas_src>
from functools import partial

import numpy as np
import jax
import jax.numpy as jnp
from jax.experimental import pallas as pl
from jax.experimental.pallas import tpu as pltpu


# ----------------------------------------------------------------------------
# Filter construction (numpy port of the reference get_kernel, no torch)
# ----------------------------------------------------------------------------
def get_kernel(factor, kernel_type, phase, kernel_width, support=None, sigma=None):
    assert kernel_type in ['lanczos', 'gauss', 'box']
    if phase == 0.5 and kernel_type != 'box':
        kernel = np.zeros([kernel_width - 1, kernel_width - 1])
    else:
        kernel = np.zeros([kernel_width, kernel_width])
    if kernel_type == 'box':
        assert phase == 0.5, 'Box filter is always half-phased'
        kernel[:] = 1.0 / (kernel_width * kernel_width)
    elif kernel_type == 'gauss':
        assert sigma, 'sigma is not specified'
        assert phase != 0.5, 'phase 1/2 for gauss not implemented'
        center = (kernel_width + 1.0) / 2.0
        sigma_sq = sigma * sigma
        for i in range(1, kernel.shape[0] + 1):
            for j in range(1, kernel.shape[1] + 1):
                di = (i - center) / 2.0
                dj = (j - center) / 2.0
                kernel[i - 1][j - 1] = np.exp(-(di * di + dj * dj) / (2 * sigma_sq))
                kernel[i - 1][j - 1] = kernel[i - 1][j - 1] / (2.0 * np.pi * sigma_sq)
    elif kernel_type == 'lanczos':
        assert support, 'support is not specified'
        center = (kernel_width + 1) / 2.0
        for i in range(1, kernel.shape[0] + 1):
            for j in range(1, kernel.shape[1] + 1):
                if phase == 0.5:
                    di = abs(i + 0.5 - center) / factor
                    dj = abs(j + 0.5 - center) / factor
                else:
                    di = abs(i - center) / factor
                    dj = abs(j - center) / factor
                val = 1
                if di != 0:
                    val = val * support * np.sin(np.pi * di) * np.sin(np.pi * di / support)
                    val = val / (np.pi * np.pi * di * di)
                if dj != 0:
                    val = val * support * np.sin(np.pi * dj) * np.sin(np.pi * dj / support)
                    val = val / (np.pi * np.pi * dj * dj)
                kernel[i - 1][j - 1] = val
    else:
        assert False, 'wrong method name'
    kernel /= kernel.sum()
    return kernel


def _separate_kernel(kernel2d):
    """Factor the (exactly rank-1) 2-D resampling kernel into 1-D row/col taps."""
    k64 = kernel2d.astype(np.float64)
    u, s, vt = np.linalg.svd(k64)
    kh = u[:, 0] * np.sqrt(s[0])
    kw = vt[0, :] * np.sqrt(s[0])
    if kh.sum() < 0:          # fix the sign ambiguity of the SVD
        kh, kw = -kh, -kw
    recon = np.outer(kh, kw)
    assert np.allclose(recon, k64, atol=1e-8 * max(1.0, np.abs(k64).max())), \
        'Downsampler kernel is not separable'
    return kh, kw


# ----------------------------------------------------------------------------
# Pallas kernel: fused separable (horizontal then vertical) strided resampling
# ----------------------------------------------------------------------------
def _sep_downsample_kernel(x_ref, mw_ref, mht_ref, o_ref):
    # x_ref: (Bc, H, W), mw_ref: (W, OW), mht_ref: (OH, H), o_ref: (Bc, OH, OW)
    mw = mw_ref[...]          # resident across the grid (constant index_map)
    mht = mht_ref[...]
    # Bc is a small trace-time constant -> fully unrolled, two MXU matmuls per
    # channel, no in-kernel reshapes / relayouts.
    for b in range(x_ref.shape[0]):
        t = jnp.dot(x_ref[b], mw, preferred_element_type=jnp.float32)       # (H, OW)
        o_ref[b] = jnp.dot(mht, t, preferred_element_type=jnp.float32
                           ).astype(o_ref.dtype)                            # (OH, OW)


def _pick_channel_block(nc, h, w, oh, ow):
    """Largest per-step channel count that (a) fits a VMEM budget, (b) divides NC."""
    per_ch = 4 * (h * w + h * ow + oh * ow)           # x tile + temp + out tile (f32)
    budget = 16 << 20                                  # channel-dependent VMEM budget
    bc = max(1, min(nc, budget // max(per_ch, 1), 8))
    while nc % bc:                                     # keep the grid exact (no padding)
        bc -= 1
    return int(bc)


def _separable_downsample(x_nc, mw, mht, block):
    """x_nc: (NC, H, W) f32, mw: (W, OW), mht: (OH, H) -> (NC, OH, OW)."""
    NC, H, W = x_nc.shape
    OW = mw.shape[1]
    OH = mht.shape[0]

    # Per-step VMEM: channel block (x + out + temp) + both resident matrices,
    # times pipeline double buffering.  Keep well under v7x's 64 MiB physical VMEM.
    per_step = 4 * (block * (H * W + OH * OW + H * OW) + W * OW + OH * H)
    vmem_limit = int(min(48 << 20, max(32 << 20, 3 * per_step)))

    return pl.pallas_call(
        _sep_downsample_kernel,
        out_shape=jax.ShapeDtypeStruct((NC, OH, OW), x_nc.dtype),
        grid_spec=pltpu.PrefetchScalarGridSpec(
            num_scalar_prefetch=0,
            grid=(NC // block,),
            in_specs=[
                pl.BlockSpec((block, H, W), lambda b: (b, 0, 0)),   # channel block
                pl.BlockSpec((W, OW), lambda b: (0, 0)),            # horizontal matrix (resident)
                pl.BlockSpec((OH, H), lambda b: (0, 0)),            # vertical matrix (resident)
            ],
            out_specs=pl.BlockSpec((block, OH, OW), lambda b: (b, 0, 0)),
        ),
        compiler_params=pltpu.CompilerParams(
            dimension_semantics=("parallel",),
            vmem_limit_bytes=vmem_limit,
        ),
    )(x_nc, mw, mht)


@partial(jax.jit, static_argnames=("pad", "block"))
def _forward_impl(x, mw, mht, *, pad, block):
    # x: (N, C, H, W).  ReplicationPad2d == edge padding (fused by XLA with the
    # reshape + cast under this jit; the conv itself is the Pallas kernel).
    if pad > 0:
        x = jnp.pad(x, ((0, 0), (0, 0), (pad, pad), (pad, pad)), mode='edge')
    N, C, H, W = x.shape
    x_nc = x.reshape(N * C, H, W).astype(jnp.float32)
    out = _separable_downsample(x_nc, mw, mht, block)
    OH, OW = out.shape[1], out.shape[2]
    # conv bias is initialized to 0 in the reference module -> nothing to add.
    return out.reshape(N, C, OH, OW)


# ----------------------------------------------------------------------------
# Downsampler wrapper (mirrors the nn.Module __init__ / forward)
# ----------------------------------------------------------------------------
class DownsamplerPallas:
    def __init__(self, n_planes, factor, kernel_type, phase=0, kernel_width=None,
                 support=None, sigma=None, preserve_size=False):
        assert phase in [0, 0.5], 'phase should be 0 or 0.5'
        if kernel_type == 'lanczos2':
            support = 2
            kernel_width = 4 * factor + 1
            kernel_type_ = 'lanczos'
        elif kernel_type == 'lanczos3':
            support = 3
            kernel_width = 6 * factor + 1
            kernel_type_ = 'lanczos'
        elif kernel_type == 'gauss12':
            kernel_width = 7
            sigma = 1 / 2
            kernel_type_ = 'gauss'
        elif kernel_type == 'gauss1sq2':
            kernel_width = 9
            sigma = 1.0 / np.sqrt(2)
            kernel_type_ = 'gauss'
        elif kernel_type in ['lanczos', 'gauss', 'box']:
            kernel_type_ = kernel_type
        else:
            assert False, 'wrong name kernel'

        self.n_planes = n_planes
        self.factor = factor
        kernel64 = get_kernel(factor, kernel_type_, phase, kernel_width,
                              support=support, sigma=sigma)
        kh, kw = _separate_kernel(kernel64)
        # torch stores the (float64) filter into float32 conv weights -> cast.
        self.kernel = kernel64.astype(np.float32)
        self.kh = kh.astype(np.float32)   # vertical 1-D taps
        self.kw = kw.astype(np.float32)   # horizontal 1-D taps

        self.preserve_size = preserve_size
        self.pad = 0
        if preserve_size:
            if self.kernel.shape[0] % 2 == 1:
                self.pad = int((self.kernel.shape[0] - 1) / 2.0)
            else:
                self.pad = int((self.kernel.shape[0] - factor) / 2.0)
        self._mat_cache = {}   # (H, W) -> (Mw dev array, MhT dev array, OH, OW)

    def _matrices(self, H, W):
        """Build (and cache on device) the 1-D resampling matrices for (H, W)."""
        key = (H, W)
        if key not in self._mat_cache:
            KH, KW = self.kh.shape[0], self.kw.shape[0]
            s = self.factor
            OH = (H - KH) // s + 1
            OW = (W - KW) // s + 1
            assert OH > 0 and OW > 0, 'input smaller than the resampling kernel'
            Mw = np.zeros((W, OW), np.float32)
            for ox in range(OW):
                Mw[ox * s:ox * s + KW, ox] = self.kw
            MhT = np.zeros((OH, H), np.float32)
            for oy in range(OH):
                MhT[oy, oy * s:oy * s + KH] = self.kh
            self._mat_cache[key] = (jnp.asarray(Mw), jnp.asarray(MhT), OH, OW)
        return self._mat_cache[key]

    def __call__(self, x):
        # x: (N, C, H, W) float32 (NCHW, like the PyTorch module)
        N, C, H, W = x.shape
        assert C == self.n_planes
        pad = self.pad if self.preserve_size else 0
        Hp, Wp = H + 2 * pad, W + 2 * pad
        Mw, MhT, OH, OW = self._matrices(Hp, Wp)
        block = _pick_channel_block(N * C, Hp, Wp, OH, OW)
        return _forward_impl(x, Mw, MhT, pad=pad, block=block)


# ----------------------------------------------------------------------------
# Reference (pure JAX, mimics the torch Conv2d exactly) for verification
# ----------------------------------------------------------------------------
def _reference_forward(x, kernel, factor, preserve_size):
    C = x.shape[1]
    KH, KW = kernel.shape
    w = np.zeros((C, C, KH, KW), np.float32)
    for i in range(C):
        w[i, i] = kernel
    if preserve_size:
        p = (KH - 1) // 2 if KH % 2 == 1 else (KH - factor) // 2
        x = jnp.pad(x, ((0, 0), (0, 0), (p, p), (p, p)), mode='edge')
    return jax.lax.conv_general_dilated(
        x, jnp.asarray(w), window_strides=(factor, factor), padding='VALID',
        dimension_numbers=('NCHW', 'OIHW', 'NCHW'))


if __name__ == "__main__":
    key = jax.random.PRNGKey(0)
    x = jax.random.normal(key, (2, 4, 16, 16), dtype=jnp.float32)

    # Downsampler(n_planes=4, factor=2, kernel_type='lanczos2', phase=0)
    ds = DownsamplerPallas(n_planes=4, factor=2, kernel_type='lanczos2',
                           phase=0, preserve_size=False)
    y = ds(x)
    jax.block_until_ready(y)
    assert y.shape == (2, 4, 4, 4), y.shape
    y_ref = _reference_forward(x, ds.kernel, 2, False)
    np.testing.assert_allclose(np.asarray(y), np.asarray(y_ref),
                               rtol=1e-4, atol=1e-5)

    # preserve_size=True path (ReplicationPad2d + strided conv)
    ds2 = DownsamplerPallas(n_planes=4, factor=2, kernel_type='lanczos2',
                            phase=0, preserve_size=True)
    y2 = ds2(x)
    jax.block_until_ready(y2)
    assert y2.shape == (2, 4, 8, 8), y2.shape
    y2_ref = _reference_forward(x, ds2.kernel, 2, True)
    np.testing.assert_allclose(np.asarray(y2), np.asarray(y2_ref),
                               rtol=1e-4, atol=1e-5)

    # box filter (phase 0.5) — covers a second kernel family
    ds3 = DownsamplerPallas(n_planes=4, factor=2, kernel_type='box',
                            phase=0.5, kernel_width=2, preserve_size=False)
    y3 = ds3(x)
    jax.block_until_ready(y3)
    assert y3.shape == (2, 4, 8, 8), y3.shape
    y3_ref = _reference_forward(x, ds3.kernel, 2, False)
    np.testing.assert_allclose(np.asarray(y3), np.asarray(y3_ref),
                               rtol=1e-4, atol=1e-5)

    print("KERNEL_OK")
</pallas_src>

<mosaic_0001>
module attributes {stable_mosaic.version = 11 : i64} {
  func.func @_sep_downsample_kernel(%arg0: i32, %arg1: memref<8x16x16xf32, #tpu.memory_space<vmem>>, %arg2: memref<16x4xf32, #tpu.memory_space<vmem>>, %arg3: memref<4x16xf32, #tpu.memory_space<vmem>>, %arg4: memref<8x4x4xf32, #tpu.memory_space<vmem>>) attributes {dimension_semantics = [#tpu.dimension_semantics<parallel>], iteration_bounds = array<i64: 1>, scalar_prefetch = 0 : i64, scratch_operands = 0 : i64, tpu.core_type = #tpu.core_type<tc>, window_params = [{transform_indices = @transform_0, window_bounds = array<i64: 8, 16, 16>}, {pipeline_mode = #tpu.pipeline_mode<synchronous>, transform_indices = @transform_1, window_bounds = array<i64: 16, 4>}, {pipeline_mode = #tpu.pipeline_mode<synchronous>, transform_indices = @transform_2, window_bounds = array<i64: 4, 16>}, {transform_indices = @transform_3, window_bounds = array<i64: 8, 4, 4>}]} {
    %c0 = arith.constant 0 : index
    %c0_0 = arith.constant 0 : index
    %0 = vector.load %arg2[%c0, %c0_0] : memref<16x4xf32, #tpu.memory_space<vmem>>, vector<16x4xf32>
    %c0_1 = arith.constant 0 : index
    %c0_2 = arith.constant 0 : index
    %1 = vector.load %arg3[%c0_1, %c0_2] : memref<4x16xf32, #tpu.memory_space<vmem>>, vector<4x16xf32>
    %c0_3 = arith.constant 0 : index
    %c0_4 = arith.constant 0 : index
    %c0_5 = arith.constant 0 : index
    %2 = vector.load %arg1[%c0_3, %c0_4, %c0_5] : memref<8x16x16xf32, #tpu.memory_space<vmem>>, vector<1x16x16xf32>
    %3 = vector.shape_cast %2 : vector<1x16x16xf32> to vector<16x16xf32>
    %cst = arith.constant dense<0.000000e+00> : vector<16x4xf32>
    %4 = tpu.matmul %3, %0, %cst {dimension_numbers = #tpu.dot_dimension_numbers<[1], [0], [0], [1], [0, 0, 1, 1], [], []>} : vector<16x16xf32>, vector<16x4xf32>, vector<16x4xf32> -> vector<16x4xf32>
    %cst_6 = arith.constant dense<0.000000e+00> : vector<4x4xf32>
    %5 = tpu.matmul %1, %4, %cst_6 {dimension_numbers = #tpu.dot_dimension_numbers<[1], [0], [0], [1], [0, 0, 1, 1], [], []>} : vector<4x16xf32>, vector<16x4xf32>, vector<4x4xf32> -> vector<4x4xf32>
    %c0_7 = arith.constant 0 : index
    %c0_8 = arith.constant 0 : index
    %c0_9 = arith.constant 0 : index
    %6 = vector.load %arg4[%c0_7, %c0_8, %c0_9] : memref<8x4x4xf32, #tpu.memory_space<vmem>>, vector<1x4x4xf32>
    %7 = vector.shape_cast %6 : vector<1x4x4xf32> to vector<4x4xf32>
    %8 = vector.shape_cast %5 : vector<4x4xf32> to vector<1x4x4xf32>
    tpu.vector_store %arg4[%c0_7, %c0_8, %c0_9], %8 {strides = array<i32>} : memref<8x4x4xf32, #tpu.memory_space<vmem>>, vector<1x4x4xf32>,
    %c1 = arith.constant 1 : index
    %c0_10 = arith.constant 0 : index
    %c0_11 = arith.constant 0 : index
    %9 = vector.load %arg1[%c1, %c0_10, %c0_11] : memref<8x16x16xf32, #tpu.memory_space<vmem>>, vector<1x16x16xf32>
    %10 = vector.shape_cast %9 : vector<1x16x16xf32> to vector<16x16xf32>
    %cst_12 = arith.constant dense<0.000000e+00> : vector<16x4xf32>
    %11 = tpu.matmul %10, %0, %cst_12 {dimension_numbers = #tpu.dot_dimension_numbers<[1], [0], [0], [1], [0, 0, 1, 1], [], []>} : vector<16x16xf32>, vector<16x4xf32>, vector<16x4xf32> -> vector<16x4xf32>
    %cst_13 = arith.constant dense<0.000000e+00> : vector<4x4xf32>
    %12 = tpu.matmul %1, %11, %cst_13 {dimension_numbers = #tpu.dot_dimension_numbers<[1], [0], [0], [1], [0, 0, 1, 1], [], []>} : vector<4x16xf32>, vector<16x4xf32>, vector<4x4xf32> -> vector<4x4xf32>
    %c1_14 = arith.constant 1 : index
    %c0_15 = arith.constant 0 : index
    %c0_16 = arith.constant 0 : index
    %13 = vector.load %arg4[%c1_14, %c0_15, %c0_16] : memref<8x4x4xf32, #tpu.memory_space<vmem>>, vector<1x4x4xf32>
    %14 = vector.shape_cast %13 : vector<1x4x4xf32> to vector<4x4xf32>
    %15 = vector.shape_cast %12 : vector<4x4xf32> to vector<1x4x4xf32>
    tpu.vector_store %arg4[%c1_14, %c0_15, %c0_16], %15 {strides = array<i32>} : memref<8x4x4xf32, #tpu.memory_space<vmem>>, vector<1x4x4xf32>,
    %c2 = arith.constant 2 : index
    %c0_17 = arith.constant 0 : index
    %c0_18 = arith.constant 0 : index
    %16 = vector.load %arg1[%c2, %c0_17, %c0_18] : memref<8x16x16xf32, #tpu.memory_space<vmem>>, vector<1x16x16xf32>
    %17 = vector.shape_cast %16 : vector<1x16x16xf32> to vector<16x16xf32>
    %cst_19 = arith.constant dense<0.000000e+00> : vector<16x4xf32>
    %18 = tpu.matmul %17, %0, %cst_19 {dimension_numbers = #tpu.dot_dimension_numbers<[1], [0], [0], [1], [0, 0, 1, 1], [], []>} : vector<16x16xf32>, vector<16x4xf32>, vector<16x4xf32> -> vector<16x4xf32>
    %cst_20 = arith.constant dense<0.000000e+00> : vector<4x4xf32>
    %19 = tpu.matmul %1, %18, %cst_20 {dimension_numbers = #tpu.dot_dimension_numbers<[1], [0], [0], [1], [0, 0, 1, 1], [], []>} : vector<4x16xf32>, vector<16x4xf32>, vector<4x4xf32> -> vector<4x4xf32>
    %c2_21 = arith.constant 2 : index
    %c0_22 = arith.constant 0 : index
    %c0_23 = arith.constant 0 : index
    %20 = vector.load %arg4[%c2_21, %c0_22, %c0_23] : memref<8x4x4xf32, #tpu.memory_space<vmem>>, vector<1x4x4xf32>
    %21 = vector.shape_cast %20 : vector<1x4x4xf32> to vector<4x4xf32>
    %22 = vector.shape_cast %19 : vector<4x4xf32> to vector<1x4x4xf32>
    tpu.vector_store %arg4[%c2_21, %c0_22, %c0_23], %22 {strides = array<i32>} : memref<8x4x4xf32, #tpu.memory_space<vmem>>, vector<1x4x4xf32>,
    %c3 = arith.constant 3 : index
    %c0_24 = arith.constant 0 : index
    %c0_25 = arith.constant 0 : index
    %23 = vector.load %arg1[%c3, %c0_24, %c0_25] : memref<8x16x16xf32, #tpu.memory_space<vmem>>, vector<1x16x16xf32>
    %24 = vector.shape_cast %23 : vector<1x16x16xf32> to vector<16x16xf32>
    %cst_26 = arith.constant dense<0.000000e+00> : vector<16x4xf32>
    %25 = tpu.matmul %24, %0, %cst_26 {dimension_numbers = #tpu.dot_dimension_numbers<[1], [0], [0], [1], [0, 0, 1, 1], [], []>} : vector<16x16xf32>, vector<16x4xf32>, vector<16x4xf32> -> vector<16x4xf32>
    %cst_27 = arith.constant dense<0.000000e+00> : vector<4x4xf32>
    %26 = tpu.matmul %1, %25, %cst_27 {dimension_numbers = #tpu.dot_dimension_numbers<[1], [0], [0], [1], [0, 0, 1, 1], [], []>} : vector<4x16xf32>, vector<16x4xf32>, vector<4x4xf32> -> vector<4x4xf32>
    %c3_28 = arith.constant 3 : index
    %c0_29 = arith.constant 0 : index
    %c0_30 = arith.constant 0 : index
    %27 = vector.load %arg4[%c3_28, %c0_29, %c0_30] : memref<8x4x4xf32, #tpu.memory_space<vmem>>, vector<1x4x4xf32>
    %28 = vector.shape_cast %27 : vector<1x4x4xf32> to vector<4x4xf32>
    %29 = vector.shape_cast %26 : vector<4x4xf32> to vector<1x4x4xf32>
    tpu.vector_store %arg4[%c3_28, %c0_29, %c0_30], %29 {strides = array<i32>} : memref<8x4x4xf32, #tpu.memory_space<vmem>>, vector<1x4x4xf32>,
    %c4 = arith.constant 4 : index
    %c0_31 = arith.constant 0 : index
    %c0_32 = arith.constant 0 : index
    %30 = vector.load %arg1[%c4, %c0_31, %c0_32] : memref<8x16x16xf32, #tpu.memory_space<vmem>>, vector<1x16x16xf32>
    %31 = vector.shape_cast %30 : vector<1x16x16xf32> to vector<16x16xf32>
    %cst_33 = arith.constant dense<0.000000e+00> : vector<16x4xf32>
    %32 = tpu.matmul %31, %0, %cst_33 {dimension_numbers = #tpu.dot_dimension_numbers<[1], [0], [0], [1], [0, 0, 1, 1], [], []>} : vector<16x16xf32>, vector<16x4xf32>, vector<16x4xf32> -> vector<16x4xf32>
    %cst_34 = arith.constant dense<0.000000e+00> : vector<4x4xf32>
    %33 = tpu.matmul %1, %32, %cst_34 {dimension_numbers = #tpu.dot_dimension_numbers<[1], [0], [0], [1], [0, 0, 1, 1], [], []>} : vector<4x16xf32>, vector<16x4xf32>, vector<4x4xf32> -> vector<4x4xf32>
    %c4_35 = arith.constant 4 : index
    %c0_36 = arith.constant 0 : index
    %c0_37 = arith.constant 0 : index
    %34 = vector.load %arg4[%c4_35, %c0_36, %c0_37] : memref<8x4x4xf32, #tpu.memory_space<vmem>>, vector<1x4x4xf32>
    %35 = vector.shape_cast %34 : vector<1x4x4xf32> to vector<4x4xf32>
    %36 = vector.shape_cast %33 : vector<4x4xf32> to vector<1x4x4xf32>
    tpu.vector_store %arg4[%c4_35, %c0_36, %c0_37], %36 {strides = array<i32>} : memref<8x4x4xf32, #tpu.memory_space<vmem>>, vector<1x4x4xf32>,
    %c5 = arith.constant 5 : index
    %c0_38 = arith.constant 0 : index
    %c0_39 = arith.constant 0 : index
    %37 = vector.load %arg1[%c5, %c0_38, %c0_39] : memref<8x16x16xf32, #tpu.memory_space<vmem>>, vector<1x16x16xf32>
    %38 = vector.shape_cast %37 : vector<1x16x16xf32> to vector<16x16xf32>
    %cst_40 = arith.constant dense<0.000000e+00> : vector<16x4xf32>
    %39 = tpu.matmul %38, %0, %cst_40 {dimension_numbers = #tpu.dot_dimension_numbers<[1], [0], [0], [1], [0, 0, 1, 1], [], []>} : vector<16x16xf32>, vector<16x4xf32>, vector<16x4xf32> -> vector<16x4xf32>
    %cst_41 = arith.constant dense<0.000000e+00> : vector<4x4xf32>
    %40 = tpu.matmul %1, %39, %cst_41 {dimension_numbers = #tpu.dot_dimension_numbers<[1], [0], [0], [1], [0, 0, 1, 1], [], []>} : vector<4x16xf32>, vector<16x4xf32>, vector<4x4xf32> -> vector<4x4xf32>
    %c5_42 = arith.constant 5 : index
    %c0_43 = arith.constant 0 : index
    %c0_44 = arith.constant 0 : index
    %41 = vector.load %arg4[%c5_42, %c0_43, %c0_44] : memref<8x4x4xf32, #tpu.memory_space<vmem>>, vector<1x4x4xf32>
    %42 = vector.shape_cast %41 : vector<1x4x4xf32> to vector<4x4xf32>
    %43 = vector.shape_cast %40 : vector<4x4xf32> to vector<1x4x4xf32>
    tpu.vector_store %arg4[%c5_42, %c0_43, %c0_44], %43 {strides = array<i32>} : memref<8x4x4xf32, #tpu.memory_space<vmem>>, vector<1x4x4xf32>,
    %c6 = arith.constant 6 : index
    %c0_45 = arith.constant 0 : index
    %c0_46 = arith.constant 0 : index
    %44 = vector.load %arg1[%c6, %c0_45, %c0_46] : memref<8x16x16xf32, #tpu.memory_space<vmem>>, vector<1x16x16xf32>
    %45 = vector.shape_cast %44 : vector<1x16x16xf32> to vector<16x16xf32>
    %cst_47 = arith.constant dense<0.000000e+00> : vector<16x4xf32>
    %46 = tpu.matmul %45, %0, %cst_47 {dimension_numbers = #tpu.dot_dimension_numbers<[1], [0], [0], [1], [0, 0, 1, 1], [], []>} : vector<16x16xf32>, vector<16x4xf32>, vector<16x4xf32> -> vector<16x4xf32>
    %cst_48 = arith.constant dense<0.000000e+00> : vector<4x4xf32>
    %47 = tpu.matmul %1, %46, %cst_48 {dimension_numbers = #tpu.dot_dimension_numbers<[1], [0], [0], [1], [0, 0, 1, 1], [], []>} : vector<4x16xf32>, vector<16x4xf32>, vector<4x4xf32> -> vector<4x4xf32>
    %c6_49 = arith.constant 6 : index
    %c0_50 = arith.constant 0 : index
    %c0_51 = arith.constant 0 : index
    %48 = vector.load %arg4[%c6_49, %c0_50, %c0_51] : memref<8x4x4xf32, #tpu.memory_space<vmem>>, vector<1x4x4xf32>
    %49 = vector.shape_cast %48 : vector<1x4x4xf32> to vector<4x4xf32>
    %50 = vector.shape_cast %47 : vector<4x4xf32> to vector<1x4x4xf32>
    tpu.vector_store %arg4[%c6_49, %c0_50, %c0_51], %50 {strides = array<i32>} : memref<8x4x4xf32, #tpu.memory_space<vmem>>, vector<1x4x4xf32>,
    %c7 = arith.constant 7 : index
    %c0_52 = arith.constant 0 : index
    %c0_53 = arith.constant 0 : index
    %51 = vector.load %arg1[%c7, %c0_52, %c0_53] : memref<8x16x16xf32, #tpu.memory_space<vmem>>, vector<1x16x16xf32>
    %52 = vector.shape_cast %51 : vector<1x16x16xf32> to vector<16x16xf32>
    %cst_54 = arith.constant dense<0.000000e+00> : vector<16x4xf32>
    %53 = tpu.matmul %52, %0, %cst_54 {dimension_numbers = #tpu.dot_dimension_numbers<[1], [0], [0], [1], [0, 0, 1, 1], [], []>} : vector<16x16xf32>, vector<16x4xf32>, vector<16x4xf32> -> vector<16x4xf32>
    %cst_55 = arith.constant dense<0.000000e+00> : vector<4x4xf32>
    %54 = tpu.matmul %1, %53, %cst_55 {dimension_numbers = #tpu.dot_dimension_numbers<[1], [0], [0], [1], [0, 0, 1, 1], [], []>} : vector<4x16xf32>, vector<16x4xf32>, vector<4x4xf32> -> vector<4x4xf32>
    %c7_56 = arith.constant 7 : index
    %c0_57 = arith.constant 0 : index
    %c0_58 = arith.constant 0 : index
    %55 = vector.load %arg4[%c7_56, %c0_57, %c0_58] : memref<8x4x4xf32, #tpu.memory_space<vmem>>, vector<1x4x4xf32>
    %56 = vector.shape_cast %55 : vector<1x4x4xf32> to vector<4x4xf32>
    %57 = vector.shape_cast %54 : vector<4x4xf32> to vector<1x4x4xf32>
    tpu.vector_store %arg4[%c7_56, %c0_57, %c0_58], %57 {strides = array<i32>} : memref<8x4x4xf32, #tpu.memory_space<vmem>>, vector<1x4x4xf32>,
    return
  }
  func.func @transform_0(%arg0: i32) -> (i32, i32, i32) {
    %c0_i32 = arith.constant 0 : i32
    %c0_i32_0 = arith.constant 0 : i32
    %c0_i32_1 = arith.constant 0 : i32
    return %arg0, %c0_i32, %c0_i32_0 : i32, i32, i32
  }
  func.func @transform_1(%arg0: i32) -> (i32, i32) {
    %c0_i32 = arith.constant 0 : i32
    %c0_i32_0 = arith.constant 0 : i32
    %c0_i32_1 = arith.constant 0 : i32
    return %c0_i32, %c0_i32_0 : i32, i32
  }
  func.func @transform_2(%arg0: i32) -> (i32, i32) {
    %c0_i32 = arith.constant 0 : i32
    %c0_i32_0 = arith.constant 0 : i32
    %c0_i32_1 = arith.constant 0 : i32
    return %c0_i32, %c0_i32_0 : i32, i32
  }
  func.func @transform_3(%arg0: i32) -> (i32, i32, i32) {
    %c0_i32 = arith.constant 0 : i32
    %c0_i32_0 = arith.constant 0 : i32
    %c0_i32_1 = arith.constant 0 : i32
    return %arg0, %c0_i32, %c0_i32_0 : i32, i32, i32
  }
}

</mosaic_0001>

<bundles_post_ra>
// kernel: _forward_impl.1
= control target key start
LH: loop header
LB: loop body
LE: loop exit
PB: predicated region body
PF: predicated region fallthrough
CT: control target
= control target key end

     0   :  { %8 = vsyncpa [#allocation3], 0  ;;  %s1651_s0 = inlined_call_operand.hbm [shape: f32[8,16,16], index: 0, kind: input, shape index: {}]   ;;  %s1652_s1 = inlined_call_operand.vmem [shape: f32[16,4], index: 1, kind: input, shape index: {}]   ;;  %s1653_s2 = inlined_call_operand.vmem [shape: f32[4,16], index: 2, kind: input, shape index: {}]   ;;  %s1654_s3 = inlined_call_operand.hbm [shape: f32[8,4,4], index: 3, kind: output, shape index: {}]  }
   0x1   :  { %9 = vsyncpa [#allocation4], 0  ;;  %s1544_s12 = smov [#allocation2]  }
   0x2   :  { %s15_s13 = sshll.u32 %s1544_s12, 4  ;;  %s16_s13 = int_to_ptr.vmem [resolvable:$true] %s15_s13 }
   0x3   :  { %s1508_s14 = scalar_lea.vmem %s16_s13, 2048  ;;  %p1513_p1 = scmp.lt.s32.totalorder %s16_s13, %s16_s13 }
   0x4   :  { %p1509_p0 = scmp.ne.s32.totalorder %s16_s13, %s1508_s14  ;;  %p1514_p2 = scmp.lt.s32.totalorder %s1508_s14, %s1508_s14 }
   0x6   :  { %p1515_p3 = por %p1514_p2, %p1513_p1 }
   0x8   :  { %p1516_p4 = pnand %p1515_p3, %p1509_p0 }
   0xa   :  { %1519 = shalt.err (!%p1516_p4)
}
   0xb   :  { %s1545_s15 = smov 128   ;;  %s1546_s16 = smov 8  }
   0xc   :  { %21 = dma.hbm_to_vmem [thread:$0]  %s1651_s0, 2048, %s16_s13, [#allocation3], %s1545_s15, %s1545_s15, %s1546_s16  }
   0xd   :  { %1540 = dma.done.wait [#allocation3], 2048  }
   0xe   :  { %1541 = vsyncadd [#allocation3], 4294965248  ;;  %vm34_vm0 = vcmask 130048   ;;  %v30_v0 = vld [vmem:[%s1652_s1 + $0x8] sm:$0xff]  ;;  %v29_v1 = vld [vmem:[%s1652_s1] sm:$0xff]  ;;  %v1547_v18 = vmov 0.0  }
   0xf   :  { %v32_v2 = vld [vmem:[#allocation2] sm:$0xff]  ;;  %1380 = vmatprep.subr.mxu0 %v30_v0  ;;  %v33_v3 = vld [vmem:[#allocation2 + $0x8] sm:$0xff]  ;;  %v192_v4 = vld [vmem:[#allocation2 + $0x10] sm:$0xff]  ;;  %1387 = vmatprep.subr.mxu1 %v1547_v18  ;;  %vm1548_vm1 = vmmov 0   ;;  %vm189_vm2 = vcmask 27648  }
  0x10   :  { %1384 = vmatprep.mubr.msk.f32.mxu0 %vm34_vm0, %v32_v2  ;;  %1381 = vmatpush3.msra.mxu0 %v30_v0  ;;  %v193_v5 = vld [vmem:[#allocation2 + $0x18] sm:$0xff]  ;;  %v348_v6 = vld [vmem:[#allocation2 + $0x20] sm:$0xff]  ;;  %v349_v7 = vld [vmem:[#allocation2 + $0x28] sm:$0xff] }
  0x11   :  { %1382 = vmatprep.subr.mxu0 %v29_v1  ;;  %v504_v8 = vld [vmem:[#allocation2 + $0x30] sm:$0xff]  ;;  %v505_v9 = vld [vmem:[#allocation2 + $0x38] sm:$0xff]  ;;  %v660_v10 = vld [vmem:[#allocation2 + $0x40] sm:$0xff]  ;;  %1391 = vmatprep.mubr.msk.f32.mxu1 %vm1548_vm1, %v1547_v18 }
  0x12   :  { %1383 = vmatpush3.msra.mxu0 %v29_v1  ;;  %v661_v11 = vld [vmem:[#allocation2 + $0x48] sm:$0xff]  ;;  %v816_v12 = vld [vmem:[#allocation2 + $0x50] sm:$0xff]  ;;  %v817_v13 = vld [vmem:[#allocation2 + $0x58] sm:$0xff] }
  0x13   :  { %1385 = vmatmul.mubr.msk.f32.vlgmr.msra.gmra.mxu0 %vm34_vm0, %v33_v3  ;;  %1394 = vmatprep.subr.mxu0 %v30_v0  ;;  %v972_v14 = vld [vmem:[#allocation2 + $0x60] sm:$0xff]  ;;  %v973_v15 = vld [vmem:[#allocation2 + $0x68] sm:$0xff]  ;;  %v1128_v16 = vld [vmem:[#allocation2 + $0x70] sm:$0xff] }
  0x14   :  { %1395 = vmatpush3.msra.mxu0 %v30_v0  ;;  %1398 = vmatprep.mubr.msk.f32.mxu0 %vm34_vm0, %v192_v4  ;;  %v1129_v17 = vld [vmem:[#allocation2 + $0x78] sm:$0xff]  ;;  %v31_v20 = vld [vmem:[%s1653_s2] sm:$0xf]  ;;  %s1549_s2 = smov [#allocation5]  }
  0x15   :  { %1396 = vmatprep.subr.mxu0 %v29_v1  ;;  %s1288_s23 = sshll.u32 %s1549_s2, 4  ;;  %s1289_s23 = int_to_ptr.vmem [resolvable:$true] %s1288_s23 }
  0x16   :  { %1397 = vmatpush3.msra.mxu0 %v29_v1  ;;  %s1520_s24 = scalar_lea.vmem %s1289_s23, 512  ;;  %p1525_p6 = scmp.lt.s32.totalorder %s1289_s23, %s1289_s23 }
  0x17   :  { %1399 = vmatmul.mubr.msk.f32.vlgmr.msra.gmra.mxu0 %vm34_vm0, %v193_v5  ;;  %1408 = vmatprep.subr.mxu0 %v30_v0  ;;  %p1521_p5 = scmp.ne.s32.totalorder %s1289_s23, %s1520_s24  ;;  %p1526_p7 = scmp.lt.s32.totalorder %s1520_s24, %s1520_s24 }
  0x18   :  { %1409 = vmatpush3.msra.mxu0 %v30_v0  ;;  %1412 = vmatprep.mubr.msk.f32.mxu0 %vm34_vm0, %v348_v6 }
  0x19   :  { %1410 = vmatprep.subr.mxu0 %v29_v1  ;;  %p1527_p8 = por %p1526_p7, %p1525_p6 }
  0x1a   :  { %1411 = vmatpush3.msra.mxu0 %v29_v1 }
  0x1b   :  { %1413 = vmatmul.mubr.msk.f32.vlgmr.msra.gmra.mxu0 %vm34_vm0, %v349_v7  ;;  %1422 = vmatprep.subr.mxu0 %v30_v0  ;;  %p1528_p9 = pnand %p1527_p8, %p1521_p5 }
  0x1c   :  { %1423 = vmatpush3.msra.mxu0 %v30_v0  ;;  %1426 = vmatprep.mubr.msk.f32.mxu0 %vm34_vm0, %v504_v8 }
  0x1d   :  { %1424 = vmatprep.subr.mxu0 %v29_v1 }
  0x1e   :  { %1425 = vmatpush3.msra.mxu0 %v29_v1 }
  0x1f   :  { %1427 = vmatmul.mubr.msk.f32.vlgmr.msra.gmra.mxu0 %vm34_vm0, %v505_v9  ;;  %1436 = vmatprep.subr.mxu0 %v30_v0 }
  0x20   :  { %1437 = vmatpush3.msra.mxu0 %v30_v0  ;;  %1440 = vmatprep.mubr.msk.f32.mxu0 %vm34_vm0, %v660_v10 }
  0x21   :  { %1438 = vmatprep.subr.mxu0 %v29_v1 }
  0x22   :  { %1439 = vmatpush3.msra.mxu0 %v29_v1 }
  0x23   :  { %1441 = vmatmul.mubr.msk.f32.vlgmr.msra.gmra.mxu0 %vm34_vm0, %v661_v11  ;;  %1450 = vmatprep.subr.mxu0 %v30_v0 }
  0x24   :  { %1451 = vmatpush3.msra.mxu0 %v30_v0  ;;  %1454 = vmatprep.mubr.msk.f32.mxu0 %vm34_vm0, %v816_v12 }
  0x25   :  { %1452 = vmatprep.subr.mxu0 %v29_v1 }
  0x26   :  { %1453 = vmatpush3.msra.mxu0 %v29_v1 }
  0x27   :  { %1455 = vmatmul.mubr.msk.f32.vlgmr.msra.gmra.mxu0 %vm34_vm0, %v817_v13  ;;  %1464 = vmatprep.subr.mxu0 %v30_v0 }
  0x28   :  { %1465 = vmatpush3.msra.mxu0 %v30_v0  ;;  %1468 = vmatprep.mubr.msk.f32.mxu0 %vm34_vm0, %v972_v14 }
  0x29   :  { %1466 = vmatprep.subr.mxu0 %v29_v1 }
  0x2a   :  { %1467 = vmatpush3.msra.mxu0 %v29_v1 }
  0x2b   :  { %1469 = vmatmul.mubr.msk.f32.vlgmr.msra.gmra.mxu0 %vm34_vm0, %v973_v15  ;;  %1478 = vmatprep.subr.mxu0 %v30_v0 }
  0x2c   :  { %1479 = vmatpush3.msra.mxu0 %v30_v0  ;;  %1482 = vmatprep.mubr.msk.f32.mxu0 %vm34_vm0, %v1128_v16 }
  0x2d   :  { %1480 = vmatprep.subr.mxu0 %v29_v1 }
  0x2e   :  { %1481 = vmatpush3.msra.mxu0 %v29_v1 }
  0x2f   :  { %1483 = vmatmul.mubr.msk.f32.vlgmr.msra.gmra.mxu0 %vm34_vm0, %v1129_v17 }
  0xd3   :  { %v1386_v19 = vpop.f32.mrf.mxu0 }
  0xd4   :  { %1388 = vmatpush3.msra.mxu1 %v1386_v19 }
  0xd5   :  { %v107_v21 = vpop.f32.mrf.mxu0  ;;  %1389 = vmatprep.subr.mxu1 %v1547_v18 }
  0xd6   :  { %1390 = vmatpush3.msra.mxu1 %v107_v21 }
  0xd7   :  { %1392 = vmatmul.mubr.msk.f32.vlgmr.msra.gmra.mxu1 %vm34_vm0, %v31_v20  ;;  %v1400_v22 = vpop.f32.mrf.mxu0  ;;  %1401 = vmatprep.subr.mxu1 %v1547_v18 }
  0xd8   :  { %1402 = vmatpush3.msra.mxu1 %v1400_v22  ;;  %1405 = vmatprep.mubr.msk.f32.mxu1 %vm1548_vm1, %v1547_v18 }
  0xd9   :  { %v266_v23 = vpop.f32.mrf.mxu0  ;;  %1403 = vmatprep.subr.mxu1 %v1547_v18 }
  0xda   :  { %1404 = vmatpush3.msra.mxu1 %v266_v23 }
  0xdb   :  { %1406 = vmatmul.mubr.msk.f32.vlgmr.msra.gmra.mxu1 %vm34_vm0, %v31_v20  ;;  %v1414_v24 = vpop.f32.mrf.mxu0  ;;  %1415 = vmatprep.subr.mxu1 %v1547_v18 }
  0xdc   :  { %1416 = vmatpush3.msra.mxu1 %v1414_v24  ;;  %1419 = vmatprep.mubr.msk.f32.mxu1 %vm1548_vm1, %v1547_v18 }
  0xdd   :  { %v422_v25 = vpop.f32.mrf.mxu0  ;;  %1417 = vmatprep.subr.mxu1 %v1547_v18 }
  0xde   :  { %1418 = vmatpush3.msra.mxu1 %v422_v25 }
  0xdf   :  { %1420 = vmatmul.mubr.msk.f32.vlgmr.msra.gmra.mxu1 %vm34_vm0, %v31_v20  ;;  %v1428_v26 = vpop.f32.mrf.mxu0  ;;  %1429 = vmatprep.subr.mxu1 %v1547_v18 }
  0xe0   :  { %1430 = vmatpush3.msra.mxu1 %v1428_v26  ;;  %1433 = vmatprep.mubr.msk.f32.mxu1 %vm1548_vm1, %v1547_v18 }
  0xe1   :  { %v578_v27 = vpop.f32.mrf.mxu0  ;;  %1431 = vmatprep.subr.mxu1 %v1547_v18 }
  0xe2   :  { %1432 = vmatpush3.msra.mxu1 %v578_v27 }
  0xe3   :  { %1434 = vmatmul.mubr.msk.f32.vlgmr.msra.gmra.mxu1 %vm34_vm0, %v31_v20  ;;  %v1442_v28 = vpop.f32.mrf.mxu0  ;;  %1443 = vmatprep.subr.mxu1 %v1547_v18 }
  0xe4   :  { %1444 = vmatpush3.msra.mxu1 %v1442_v28  ;;  %1447 = vmatprep.mubr.msk.f32.mxu1 %vm1548_vm1, %v1547_v18 }
  0xe5   :  { %v734_v29 = vpop.f32.mrf.mxu0  ;;  %1445 = vmatprep.subr.mxu1 %v1547_v18 }
  0xe6   :  { %1446 = vmatpush3.msra.mxu1 %v734_v29 }
  0xe7   :  { %1448 = vmatmul.mubr.msk.f32.vlgmr.msra.gmra.mxu1 %vm34_vm0, %v31_v20  ;;  %v1456_v30 = vpop.f32.mrf.mxu0  ;;  %1457 = vmatprep.subr.mxu1 %v1547_v18 }
  0xe8   :  { %1458 = vmatpush3.msra.mxu1 %v1456_v30  ;;  %1461 = vmatprep.mubr.msk.f32.mxu1 %vm1548_vm1, %v1547_v18 }
  0xe9   :  { %v890_v31 = vpop.f32.mrf.mxu0  ;;  %1459 = vmatprep.subr.mxu1 %v1547_v18 }
  0xea   :  { %1460 = vmatpush3.msra.mxu1 %v890_v31 }
  0xeb   :  { %1462 = vmatmul.mubr.msk.f32.vlgmr.msra.gmra.mxu1 %vm34_vm0, %v31_v20  ;;  %v1470_v32 = vpop.f32.mrf.mxu0  ;;  %1471 = vmatprep.subr.mxu1 %v1547_v18 }
  0xec   :  { %1472 = vmatpush3.msra.mxu1 %v1470_v32  ;;  %1475 = vmatprep.mubr.msk.f32.mxu1 %vm1548_vm1, %v1547_v18 }
  0xed   :  { %v1046_v33 = vpop.f32.mrf.mxu0  ;;  %1473 = vmatprep.subr.mxu1 %v1547_v18 }
  0xee   :  { %1474 = vmatpush3.msra.mxu1 %v1046_v33 }
  0xef   :  { %1476 = vmatmul.mubr.msk.f32.vlgmr.msra.gmra.mxu1 %vm34_vm0, %v31_v20  ;;  %v1484_v34 = vpop.f32.mrf.mxu0  ;;  %1485 = vmatprep.subr.mxu1 %v1547_v18 }
  0xf0   :  { %1486 = vmatpush3.msra.mxu1 %v1484_v34  ;;  %1489 = vmatprep.mubr.msk.f32.mxu1 %vm1548_vm1, %v1547_v18 }
  0xf1   :  { %v1202_v35 = vpop.f32.mrf.mxu0  ;;  %1487 = vmatprep.subr.mxu1 %v1547_v18 }
  0xf2   :  { %1488 = vmatpush3.msra.mxu1 %v1202_v35 }
  0xf3   :  { %1490 = vmatmul.mubr.msk.f32.vlgmr.msra.gmra.mxu1 %vm34_vm0, %v31_v20 }
 0x197   :  { %v185_v36 = vpop.f32.mrf.mxu1 }
 0x198   :  { %190 = vst.msk [vmem:[#allocation5] sm:$0xf] %vm189_vm2, %v185_v36 }
 0x199   :  { %v1393_v37 = vpop.f32.mrf.mxu1 }
 0x19b   :  { %v341_v38 = vpop.f32.mrf.mxu1 }
 0x19c   :  { %346 = vst.msk [vmem:[#allocation5 + $0x4] sm:$0xf] %vm189_vm2, %v341_v38 }
 0x19d   :  { %v1407_v39 = vpop.f32.mrf.mxu1 }
 0x19f   :  { %v497_v40 = vpop.f32.mrf.mxu1 }
 0x1a0   :  { %502 = vst.msk [vmem:[#allocation5 + $0x8] sm:$0xf] %vm189_vm2, %v497_v40 }
 0x1a1   :  { %v1421_v41 = vpop.f32.mrf.mxu1 }
 0x1a3   :  { %v653_v42 = vpop.f32.mrf.mxu1 }
 0x1a4   :  { %658 = vst.msk [vmem:[#allocation5 + $0xc] sm:$0xf] %vm189_vm2, %v653_v42 }
 0x1a5   :  { %v1435_v43 = vpop.f32.mrf.mxu1 }
 0x1a7   :  { %v809_v44 = vpop.f32.mrf.mxu1 }
 0x1a8   :  { %814 = vst.msk [vmem:[#allocation5 + $0x10] sm:$0xf] %vm189_vm2, %v809_v44 }
 0x1a9   :  { %v1449_v45 = vpop.f32.mrf.mxu1 }
 0x1ab   :  { %v965_v46 = vpop.f32.mrf.mxu1 }
 0x1ac   :  { %970 = vst.msk [vmem:[#allocation5 + $0x14] sm:$0xf] %vm189_vm2, %v965_v46 }
 0x1ad   :  { %v1463_v47 = vpop.f32.mrf.mxu1 }
 0x1af   :  { %v1121_v48 = vpop.f32.mrf.mxu1 }
 0x1b0   :  { %1126 = vst.msk [vmem:[#allocation5 + $0x18] sm:$0xf] %vm189_vm2, %v1121_v48 }
 0x1b1   :  { %v1477_v49 = vpop.f32.mrf.mxu1 }
 0x1b3   :  { %v1277_v50 = vpop.f32.mrf.mxu1 }
 0x1b4   :  { %1282 = vst.msk [vmem:[#allocation5 + $0x1c] sm:$0xf] %vm189_vm2, %v1277_v50 }
 0x1b5   :  { %v1491_v51 = vpop.f32.mrf.mxu1 }
 0x1b6   :  { %1531 = shalt.err (!%p1528_p9)
}
 0x1b7   :  { %s1550_s25 = smov 64   ;;  %s1551_s26 = smov 4  }
 0x1b8   :  { %1294 = dma.vmem_to_hbm [thread:$0]  %s1289_s23, 512, %s1654_s3, [#allocation4], %s1550_s25, %s1550_s25, %s1551_s26  }
 0x1b9   :  { %1542 = dma.done.wait [#allocation4], 512  }
 0x1ba   :  { %1543 = vsyncadd [#allocation4], 4294966784 }
 0x1bb   :  { %1298 = vsyncpa [#allocation3], 1 }
 0x1bc   :  { %1299 = vsyncpa [#allocation4], 1 }

</bundles_post_ra>
